<compile_context>
chip_gen: v7x
topology: tpu7x:2x2x1
jax: 0.10.0
libtpu: 0.0.40
codegen_flags: <defaults>
</compile_context>

<pallas_src>
import functools

import jax
import jax.numpy as jnp
from jax import lax
from jax.experimental import pallas as pl
from jax.experimental.pallas import tpu as pltpu


def _attn_kernel(gamma_ref,            # SMEM (1, 1)
                 x_q_ref,              # VMEM (1, TQ, C)  query-tile slab of x
                 x_full_ref,           # VMEM (1, N, C)   full x (resident per batch)
                 wq_ref, wk_ref,       # VMEM (C, Cp)     lane-padded q/k projections
                 wv_ref,               # VMEM (C, C)
                 bq_ref, bk_ref,       # VMEM (1, Cp) f32 (zero-padded)
                 bv_ref,               # VMEM (1, C)  f32
                 o_ref,                # VMEM (1, TQ, C)
                 k_scr, v_scr,         # VMEM (N, Cp), (N, C) scratch, compute dtype
                 *, compute_dtype):
    cdt = compute_dtype
    approx = jnp.dtype(cdt) == jnp.dtype(jnp.bfloat16)

    # K / V projections once per batch element (first query tile); they stay
    # resident in VMEM scratch across the sequential query-tile axis.
    @pl.when(pl.program_id(1) == 0)
    def _():
        xf = x_full_ref[0].astype(cdt)                                          # (N, C)
        k = jnp.dot(xf, wk_ref[...], preferred_element_type=jnp.float32) + bk_ref[...]
        v = jnp.dot(xf, wv_ref[...], preferred_element_type=jnp.float32) + bv_ref[...]
        k_scr[...] = k.astype(cdt)
        v_scr[...] = v.astype(cdt)

    xq = x_q_ref[0]                                                             # (TQ, C)
    q = jnp.dot(xq.astype(cdt), wq_ref[...],
                preferred_element_type=jnp.float32) + bq_ref[...]               # (TQ, Cp)

    # s[i, j] = sum_c q[i, c] * k[j, c]  (torch.bmm(q, k) in NCHW layout).
    # Contraction expressed directly so no explicit transpose of k is built.
    s = lax.dot_general(q.astype(cdt), k_scr[...],
                        (((1,), (1,)), ((), ())),
                        preferred_element_type=jnp.float32)                     # (TQ, N)

    # Softmax over keys (all keys resident), normalization deferred.
    m = jnp.max(s, axis=-1, keepdims=True)
    e = jnp.exp(s - m)
    l = jnp.sum(e, axis=-1, keepdims=True)

    # out[i, c] = sum_j softmax(s)[i, j] * v[j, c]  (== torch.bmm(v, attn^T))
    out_un = jnp.dot(e.astype(cdt), v_scr[...],
                     preferred_element_type=jnp.float32)                        # (TQ, C)
    out = out_un * pl.reciprocal(l, approx=approx)

    gamma = gamma_ref[0, 0]
    o_ref[0] = (gamma * out + xq.astype(jnp.float32)).astype(o_ref.dtype)


def _pick_tq(n, target=128):
    """Largest tile <= target (multiple of 8) dividing n; else full n."""
    tq = min(target, n)
    while tq > 8 and n % tq != 0:
        tq //= 2
    if n % tq != 0 or (tq % 8 != 0 and tq != n):
        return n
    return tq


def self_attention_pallas(x_nchw, wq, bq, wk, bk, wv, bv, gamma,
                          *, compute_dtype=jnp.bfloat16, tq=None):
    """x_nchw: (B, C, H, W). Conv weights in PyTorch layout: wq/wk (C//8, C), wv (C, C)."""
    B, C, H, W = x_nchw.shape
    N = H * W
    Cq = wq.shape[0]
    Cp = max(128, ((Cq + 127) // 128) * 128)       # lane-pad the q/k channel dim

    if tq is None:
        # TQ<=128 keeps the (TQ, N) f32 score tile <= 2 MiB at N=4096 -> fits
        # v7x's 64 MiB VMEM; on v6e/v5e (128 MiB) 256-512 is also fine.
        tq = _pick_tq(N, target=128)
    if N % tq != 0 or (tq % 8 != 0 and tq != N):
        tq = N
    nq = N // tq

    cdt = compute_dtype

    # NCHW -> (B, N, C) pixel-major layout for the kernel.
    x_flat = jnp.transpose(x_nchw, (0, 2, 3, 1)).reshape(B, N, C)

    # Matmul-friendly layouts (C_in, C_out); q/k weights/biases zero-padded to
    # Cp lanes (padding adds zero columns to q/k -> QK^T unchanged).
    wq_t = jnp.zeros((C, Cp), cdt).at[:, :Cq].set(wq.T.astype(cdt))
    wk_t = jnp.zeros((C, Cp), cdt).at[:, :Cq].set(wk.T.astype(cdt))
    wv_t = wv.T.astype(cdt)
    bq2 = jnp.zeros((1, Cp), jnp.float32).at[:, :Cq].set(bq.astype(jnp.float32))
    bk2 = jnp.zeros((1, Cp), jnp.float32).at[:, :Cq].set(bk.astype(jnp.float32))
    bv2 = bv.reshape(1, C).astype(jnp.float32)
    gamma2 = jnp.asarray(gamma, jnp.float32).reshape(1, 1)

    kernel = functools.partial(_attn_kernel, compute_dtype=cdt)

    out_flat = pl.pallas_call(
        kernel,
        out_shape=jax.ShapeDtypeStruct((B, N, C), x_flat.dtype),
        grid=(B, nq),
        in_specs=[
            pl.BlockSpec(memory_space=pltpu.SMEM),                      # gamma
            pl.BlockSpec((1, tq, C), lambda b, i: (b, i, 0)),           # x (query tile)
            pl.BlockSpec((1, N, C), lambda b, i: (b, 0, 0)),            # x (full, K/V src)
            pl.BlockSpec((C, Cp), lambda b, i: (0, 0)),                 # wq (resident)
            pl.BlockSpec((C, Cp), lambda b, i: (0, 0)),                 # wk
            pl.BlockSpec((C, C), lambda b, i: (0, 0)),                  # wv
            pl.BlockSpec((1, Cp), lambda b, i: (0, 0)),                 # bq
            pl.BlockSpec((1, Cp), lambda b, i: (0, 0)),                 # bk
            pl.BlockSpec((1, C), lambda b, i: (0, 0)),                  # bv
        ],
        out_specs=pl.BlockSpec((1, tq, C), lambda b, i: (b, i, 0)),
        scratch_shapes=[
            pltpu.VMEM((N, Cp), cdt),      # K, persistent across query tiles
            pltpu.VMEM((N, C), cdt),       # V, persistent across query tiles
        ],
        compiler_params=pltpu.CompilerParams(
            dimension_semantics=("parallel", "arbitrary"),
            vmem_limit_bytes=48 * 1024 * 1024),
    )(gamma2, x_flat, x_flat, wq_t, wk_t, wv_t, bq2, bk2, bv2)

    # (B, N, C) -> (B, C, H, W)
    return jnp.transpose(out_flat.reshape(B, H, W, C), (0, 3, 1, 2))


def self_attention_ref(x_nchw, wq, bq, wk, bk, wv, bv, gamma):
    """Plain-JAX reference mirroring the PyTorch forward exactly (f32)."""
    B, C, H, W = x_nchw.shape
    N = H * W
    x_flat = x_nchw.reshape(B, C, N)                                   # (B, C, N)
    q = jnp.einsum('oc,bcn->bon', wq, x_flat) + bq[None, :, None]      # (B, C//8, N)
    k = jnp.einsum('oc,bcn->bon', wk, x_flat) + bk[None, :, None]
    v = jnp.einsum('oc,bcn->bon', wv, x_flat) + bv[None, :, None]      # (B, C, N)
    qT = jnp.transpose(q, (0, 2, 1))                                   # (B, N, C//8)
    attn = jnp.einsum('bic,bcj->bij', qT, k)                           # (B, N, N)
    attn = jax.nn.softmax(attn, axis=-1)
    out = jnp.einsum('bcj,bij->bci', v, attn)                          # (B, C, N)
    out = out.reshape(B, C, H, W)
    return gamma * out + x_nchw


if __name__ == "__main__":
    key = jax.random.PRNGKey(0)
    B, C, H, W = 2, 16, 16, 16          # N = 256, query/key channels = 2
    Cq = C // 8

    k_x, k_wq, k_bq, k_wk, k_bk, k_wv, k_bv = jax.random.split(key, 7)
    x = jax.random.normal(k_x, (B, C, H, W), jnp.float32)

    # Deterministic parameter init (shapes follow nn.Conv2d(C, C_out, 1)).
    wq = jax.random.normal(k_wq, (Cq, C), jnp.float32) * 0.1
    bq = jax.random.normal(k_bq, (Cq,), jnp.float32) * 0.1
    wk = jax.random.normal(k_wk, (Cq, C), jnp.float32) * 0.1
    bk = jax.random.normal(k_bk, (Cq,), jnp.float32) * 0.1
    wv = jax.random.normal(k_wv, (C, C), jnp.float32) * 0.1
    bv = jax.random.normal(k_bv, (C,), jnp.float32) * 0.1

    gamma0 = jnp.zeros((), jnp.float32)            # module init: gamma = 0
    gamma1 = jnp.asarray(0.7, jnp.float32)

    ref1 = self_attention_ref(x, wq, bq, wk, bk, wv, bv, gamma1)

    # 1) f32 compute path, multi-tile query grid (structure check, tight tol).
    out_f32 = jax.block_until_ready(
        self_attention_pallas(x, wq, bq, wk, bk, wv, bv, gamma1,
                              compute_dtype=jnp.float32, tq=64))
    assert jnp.allclose(out_f32, ref1, atol=2e-4, rtol=2e-4)

    # 2) default bf16-MXU path (f32 accumulation) — relaxed bf16 tolerance.
    out_bf16 = jax.block_until_ready(
        self_attention_pallas(x, wq, bq, wk, bk, wv, bv, gamma1))
    assert jnp.allclose(out_bf16, ref1, atol=3e-2, rtol=3e-2)

    # 3) gamma = 0 (module init) must return the input exactly.
    out0 = jax.block_until_ready(
        self_attention_pallas(x, wq, bq, wk, bk, wv, bv, gamma0))
    assert jnp.allclose(out0, x, atol=1e-6, rtol=1e-6)

    print("KERNEL_OK")
</pallas_src>

<mosaic_0001>
module attributes {stable_mosaic.version = 11 : i64} {
  func.func @_attn_kernel(%arg0: i32, %arg1: i32, %arg2: memref<1x1xf32, #tpu.memory_space<smem>>, %arg3: memref<1x64x16xf32, #tpu.memory_space<vmem>>, %arg4: memref<1x256x16xf32, #tpu.memory_space<vmem>>, %arg5: memref<16x128xf32, #tpu.memory_space<vmem>>, %arg6: memref<16x128xf32, #tpu.memory_space<vmem>>, %arg7: memref<16x16xf32, #tpu.memory_space<vmem>>, %arg8: memref<1x128xf32, #tpu.memory_space<vmem>>, %arg9: memref<1x128xf32, #tpu.memory_space<vmem>>, %arg10: memref<1x16xf32, #tpu.memory_space<vmem>>, %arg11: memref<1x64x16xf32, #tpu.memory_space<vmem>>, %arg12: memref<256x128xf32, #tpu.memory_space<vmem>>, %arg13: memref<256x16xf32, #tpu.memory_space<vmem>>) attributes {dimension_semantics = [#tpu.dimension_semantics<parallel>, #tpu.dimension_semantics<arbitrary>], iteration_bounds = array<i64: 2, 4>, scalar_prefetch = 0 : i64, scratch_operands = 2 : i64, tpu.core_type = #tpu.core_type<tc>, window_params = [{transform_indices = @transform_0, window_bounds = array<i64: 1, 1>}, {transform_indices = @transform_1, window_bounds = array<i64: 1, 64, 16>}, {transform_indices = @transform_2, window_bounds = array<i64: 1, 256, 16>}, {pipeline_mode = #tpu.pipeline_mode<synchronous>, transform_indices = @transform_3, window_bounds = array<i64: 16, 128>}, {pipeline_mode = #tpu.pipeline_mode<synchronous>, transform_indices = @transform_4, window_bounds = array<i64: 16, 128>}, {pipeline_mode = #tpu.pipeline_mode<synchronous>, transform_indices = @transform_5, window_bounds = array<i64: 16, 16>}, {pipeline_mode = #tpu.pipeline_mode<synchronous>, transform_indices = @transform_6, window_bounds = array<i64: 1, 128>}, {pipeline_mode = #tpu.pipeline_mode<synchronous>, transform_indices = @transform_7, window_bounds = array<i64: 1, 128>}, {pipeline_mode = #tpu.pipeline_mode<synchronous>, transform_indices = @transform_8, window_bounds = array<i64: 1, 16>}, {transform_indices = @transform_9, window_bounds = array<i64: 1, 64, 16>}]} {
    %c0_i32 = arith.constant 0 : i32
    %0 = arith.cmpi eq, %arg1, %c0_i32 : i32
    %1 = arith.extui %0 : i1 to i32
    %c0_i32_0 = arith.constant 0 : i32
    %2 = arith.cmpi ne, %1, %c0_i32_0 : i32
    scf.if %2 {
      %c0_20 = arith.constant 0 : index
      %c0_21 = arith.constant 0 : index
      %c0_22 = arith.constant 0 : index
      %31 = vector.load %arg4[%c0_20, %c0_21, %c0_22] : memref<1x256x16xf32, #tpu.memory_space<vmem>>, vector<1x256x16xf32>
      %32 = vector.shape_cast %31 : vector<1x256x16xf32> to vector<256x16xf32>
      %c0_23 = arith.constant 0 : index
      %c0_24 = arith.constant 0 : index
      %33 = vector.load %arg6[%c0_23, %c0_24] : memref<16x128xf32, #tpu.memory_space<vmem>>, vector<16x128xf32>
      %cst_25 = arith.constant dense<0.000000e+00> : vector<256x128xf32>
      %34 = tpu.matmul %32, %33, %cst_25 {dimension_numbers = #tpu.dot_dimension_numbers<[1], [0], [0], [1], [0, 0, 1, 1], [], []>} : vector<256x16xf32>, vector<16x128xf32>, vector<256x128xf32> -> vector<256x128xf32>
      %c0_26 = arith.constant 0 : index
      %c0_27 = arith.constant 0 : index
      %35 = vector.load %arg9[%c0_26, %c0_27] : memref<1x128xf32, #tpu.memory_space<vmem>>, vector<1x128xf32>
      %36 = vector.broadcast %35 : vector<1x128xf32> to vector<256x128xf32>
      %37 = arith.addf %34, %36 : vector<256x128xf32>
      %c0_28 = arith.constant 0 : index
      %c0_29 = arith.constant 0 : index
      %38 = vector.load %arg7[%c0_28, %c0_29] : memref<16x16xf32, #tpu.memory_space<vmem>>, vector<16x16xf32>
      %cst_30 = arith.constant dense<0.000000e+00> : vector<256x16xf32>
      %39 = tpu.matmul %32, %38, %cst_30 {dimension_numbers = #tpu.dot_dimension_numbers<[1], [0], [0], [1], [0, 0, 1, 1], [], []>} : vector<256x16xf32>, vector<16x16xf32>, vector<256x16xf32> -> vector<256x16xf32>
      %c0_31 = arith.constant 0 : index
      %c0_32 = arith.constant 0 : index
      %40 = vector.load %arg10[%c0_31, %c0_32] : memref<1x16xf32, #tpu.memory_space<vmem>>, vector<1x16xf32>
      %41 = vector.broadcast %40 : vector<1x16xf32> to vector<256x16xf32>
      %42 = arith.addf %39, %41 : vector<256x16xf32>
      %c0_33 = arith.constant 0 : index
      %c0_34 = arith.constant 0 : index
      %43 = vector.load %arg12[%c0_33, %c0_34] : memref<256x128xf32, #tpu.memory_space<vmem>>, vector<256x128xf32>
      tpu.vector_store %arg12[%c0_33, %c0_34], %37 {strides = array<i32>} : memref<256x128xf32, #tpu.memory_space<vmem>>, vector<256x128xf32>,
      %c0_35 = arith.constant 0 : index
      %c0_36 = arith.constant 0 : index
      %44 = vector.load %arg13[%c0_35, %c0_36] : memref<256x16xf32, #tpu.memory_space<vmem>>, vector<256x16xf32>
      tpu.vector_store %arg13[%c0_35, %c0_36], %42 {strides = array<i32>} : memref<256x16xf32, #tpu.memory_space<vmem>>, vector<256x16xf32>,
    } else {
    }
    %c0 = arith.constant 0 : index
    %c0_1 = arith.constant 0 : index
    %c0_2 = arith.constant 0 : index
    %3 = vector.load %arg3[%c0, %c0_1, %c0_2] : memref<1x64x16xf32, #tpu.memory_space<vmem>>, vector<1x64x16xf32>
    %4 = vector.shape_cast %3 : vector<1x64x16xf32> to vector<64x16xf32>
    %c0_3 = arith.constant 0 : index
    %c0_4 = arith.constant 0 : index
    %5 = vector.load %arg5[%c0_3, %c0_4] : memref<16x128xf32, #tpu.memory_space<vmem>>, vector<16x128xf32>
    %cst = arith.constant dense<0.000000e+00> : vector<64x128xf32>
    %6 = tpu.matmul %4, %5, %cst {dimension_numbers = #tpu.dot_dimension_numbers<[1], [0], [0], [1], [0, 0, 1, 1], [], []>} : vector<64x16xf32>, vector<16x128xf32>, vector<64x128xf32> -> vector<64x128xf32>
    %c0_5 = arith.constant 0 : index
    %c0_6 = arith.constant 0 : index
    %7 = vector.load %arg8[%c0_5, %c0_6] : memref<1x128xf32, #tpu.memory_space<vmem>>, vector<1x128xf32>
    %8 = vector.broadcast %7 : vector<1x128xf32> to vector<64x128xf32>
    %9 = arith.addf %6, %8 : vector<64x128xf32>
    %c0_7 = arith.constant 0 : index
    %c0_8 = arith.constant 0 : index
    %10 = vector.load %arg12[%c0_7, %c0_8] : memref<256x128xf32, #tpu.memory_space<vmem>>, vector<256x128xf32>
    %cst_9 = arith.constant dense<0.000000e+00> : vector<64x256xf32>
    %11 = tpu.matmul %9, %10, %cst_9 {dimension_numbers = #tpu.dot_dimension_numbers<[1], [1], [0], [0], [0, 0, 1, 0], [], []>} : vector<64x128xf32>, vector<256x128xf32>, vector<64x256xf32> -> vector<64x256xf32>
    %cst_10 = arith.constant dense<0xFF800000> : vector<64xf32>
    %12 = vector.multi_reduction <maximumf>, %11, %cst_10 [1] : vector<64x256xf32> to vector<64xf32>
    %13 = vector.shape_cast %12 : vector<64xf32> to vector<64x1xf32>
    %14 = vector.broadcast %13 : vector<64x1xf32> to vector<64x256xf32>
    %15 = arith.subf %11, %14 : vector<64x256xf32>
    %16 = math.exp %15 : vector<64x256xf32>
    %cst_11 = arith.constant dense<0.000000e+00> : vector<64xf32>
    %17 = vector.multi_reduction <add>, %16, %cst_11 [1] : vector<64x256xf32> to vector<64xf32>
    %18 = vector.shape_cast %17 : vector<64xf32> to vector<64x1xf32>
    %c0_12 = arith.constant 0 : index
    %c0_13 = arith.constant 0 : index
    %19 = vector.load %arg13[%c0_12, %c0_13] : memref<256x16xf32, #tpu.memory_space<vmem>>, vector<256x16xf32>
    %cst_14 = arith.constant dense<0.000000e+00> : vector<64x16xf32>
    %20 = tpu.matmul %16, %19, %cst_14 {dimension_numbers = #tpu.dot_dimension_numbers<[1], [0], [0], [1], [0, 0, 1, 1], [], []>} : vector<64x256xf32>, vector<256x16xf32>, vector<64x16xf32> -> vector<64x16xf32>
    %21 = tpu.reciprocal %18 : vector<64x1xf32> -> vector<64x1xf32>
    %22 = vector.broadcast %21 : vector<64x1xf32> to vector<64x16xf32>
    %23 = arith.mulf %20, %22 : vector<64x16xf32>
    %c0_15 = arith.constant 0 : index
    %c0_16 = arith.constant 0 : index
    %24 = memref.load %arg2[%c0_15, %c0_16] : memref<1x1xf32, #tpu.memory_space<smem>>
    %25 = vector.broadcast %24 : f32 to vector<64x16xf32>
    %26 = arith.mulf %25, %23 : vector<64x16xf32>
    %27 = arith.addf %26, %4 : vector<64x16xf32>
    %c0_17 = arith.constant 0 : index
    %c0_18 = arith.constant 0 : index
    %c0_19 = arith.constant 0 : index
    %28 = vector.load %arg11[%c0_17, %c0_18, %c0_19] : memref<1x64x16xf32, #tpu.memory_space<vmem>>, vector<1x64x16xf32>
    %29 = vector.shape_cast %28 : vector<1x64x16xf32> to vector<64x16xf32>
    %30 = vector.shape_cast %27 : vector<64x16xf32> to vector<1x64x16xf32>
    tpu.vector_store %arg11[%c0_17, %c0_18, %c0_19], %30 {strides = array<i32>} : memref<1x64x16xf32, #tpu.memory_space<vmem>>, vector<1x64x16xf32>,
    return
  }
  func.func @transform_0(%arg0: i32, %arg1: i32) -> (i32, i32) {
    %c0_i32 = arith.constant 0 : i32
    %c0_i32_0 = arith.constant 0 : i32
    %c0_i32_1 = arith.constant 0 : i32
    return %c0_i32, %c0_i32_0 : i32, i32
  }
  func.func @transform_1(%arg0: i32, %arg1: i32) -> (i32, i32, i32) {
    %c0_i32 = arith.constant 0 : i32
    %c0_i32_0 = arith.constant 0 : i32
    return %arg0, %arg1, %c0_i32 : i32, i32, i32
  }
  func.func @transform_2(%arg0: i32, %arg1: i32) -> (i32, i32, i32) {
    %c0_i32 = arith.constant 0 : i32
    %c0_i32_0 = arith.constant 0 : i32
    %c0_i32_1 = arith.constant 0 : i32
    return %arg0, %c0_i32, %c0_i32_0 : i32, i32, i32
  }
  func.func @transform_3(%arg0: i32, %arg1: i32) -> (i32, i32) {
    %c0_i32 = arith.constant 0 : i32
    %c0_i32_0 = arith.constant 0 : i32
    %c0_i32_1 = arith.constant 0 : i32
    return %c0_i32, %c0_i32_0 : i32, i32
  }
  func.func @transform_4(%arg0: i32, %arg1: i32) -> (i32, i32) {
    %c0_i32 = arith.constant 0 : i32
    %c0_i32_0 = arith.constant 0 : i32
    %c0_i32_1 = arith.constant 0 : i32
    return %c0_i32, %c0_i32_0 : i32, i32
  }
  func.func @transform_5(%arg0: i32, %arg1: i32) -> (i32, i32) {
    %c0_i32 = arith.constant 0 : i32
    %c0_i32_0 = arith.constant 0 : i32
    %c0_i32_1 = arith.constant 0 : i32
    return %c0_i32, %c0_i32_0 : i32, i32
  }
  func.func @transform_6(%arg0: i32, %arg1: i32) -> (i32, i32) {
    %c0_i32 = arith.constant 0 : i32
    %c0_i32_0 = arith.constant 0 : i32
    %c0_i32_1 = arith.constant 0 : i32
    return %c0_i32, %c0_i32_0 : i32, i32
  }
  func.func @transform_7(%arg0: i32, %arg1: i32) -> (i32, i32) {
    %c0_i32 = arith.constant 0 : i32
    %c0_i32_0 = arith.constant 0 : i32
    %c0_i32_1 = arith.constant 0 : i32
    return %c0_i32, %c0_i32_0 : i32, i32
  }
  func.func @transform_8(%arg0: i32, %arg1: i32) -> (i32, i32) {
    %c0_i32 = arith.constant 0 : i32
    %c0_i32_0 = arith.constant 0 : i32
    %c0_i32_1 = arith.constant 0 : i32
    return %c0_i32, %c0_i32_0 : i32, i32
  }
  func.func @transform_9(%arg0: i32, %arg1: i32) -> (i32, i32, i32) {
    %c0_i32 = arith.constant 0 : i32
    %c0_i32_0 = arith.constant 0 : i32
    return %arg0, %arg1, %c0_i32 : i32, i32, i32
  }
}

</mosaic_0001>

<bundles_post_ra>
// kernel: tpu_custom_call.1
= control target key start
LH: loop header
LB: loop body
LE: loop exit
PB: predicated region body
PF: predicated region fallthrough
CT: control target
= control target key end

     0   :  { %s2378_s11 = smov 0   ;;  %s2380_s12 = smov 0   ;;  %s2799_s0 = inlined_call_operand.<no memory space> [shape: f32[1,1], index: 0, kind: input, shape index: {}]   ;;  %s2800_s1 = inlined_call_operand.vmem [shape: f32[2,256,16], index: 1, kind: input, shape index: {}]   ;;  %s2801_s2 = inlined_call_operand.vmem [shape: f32[2,256,16], index: 2, kind: input, shape index: {}]   ;;  %s2802_s3 = inlined_call_operand.vmem [shape: f32[16,128], index: 3, kind: input, shape index: {}]   ;;  %s2803_s4 = inlined_call_operand.vmem [shape: f32[16,128], index: 4, kind: input, shape index: {}]   ;;  %s2804_s5 = inlined_call_operand.vmem [shape: f32[16,16], index: 5, kind: input, shape index: {}]   ;;  %s2805_s6 = inlined_call_operand.vmem [shape: f32[1,128], index: 6, kind: input, shape index: {}]   ;;  %s2806_s7 = inlined_call_operand.vmem [shape: f32[1,128], index: 7, kind: input, shape index: {}]   ;;  %s2807_s8 = inlined_call_operand.vmem [shape: f32[1,16], index: 8, kind: input, shape index: {}]   ;;  %s2808_s9 = inlined_call_operand.vmem [shape: f32[2,256,16], index: 9, kind: output, shape index: {}]  }
   0x1   :  { %14 = sst [smem:[#allocation4]] %s2799_s0  ;;  %s2382_s13 = smov 0  }
   0x2   :  { %s2384_s14 = smov 0   ;;  %s2386_s15 = smov 0  }
   0x3 LB: > { %s29_s0 = sadd.s32 1, %s2315_s13  ;;  %s32_s16 = sadd.s32 1, %s2319_s14  ;;  %s2323_s15 = sphi %s2386_s15, %s20_s15   ;;  %s2319_s14 = sphi %s2384_s14, %s2812_s14   ;;  %s2315_s13 = sphi %s2382_s13, %s2811_s13   ;;  %s2311_s12 = sphi %s2380_s12, %s2810_s12   ;;  %s2307_s11 = sphi %s2378_s11, %s2809_s11  }
   0x4   : > { %p30_p0 = scmp.ge.s32.totalorder %s29_s0, 4  ;;  %p1731_p1 = scmp.ge.s32.totalorder %s2323_s15, 1 }
   0x5   : > { %p319_p2 = scmp.lt.s32.totalorder %s2323_s15, 9 }
   0x6   : > { %s2814_s0 = smov (%p30_p0, %s29_s0), 0  ;;  %s2816_s16 = smov (!%p30_p0, %s32_s16), %s2319_s14 }
   0x7   : > { %p320_p3 = pnand %p1731_p1, %p319_p2  ;;  %p34_p4 = scmp.ge.s32.totalorder %s2816_s16, 2 }
   0x8   : > { %s1732_s17 = sshll.u32 (!%p320_p3), %s2307_s11, 3  ;;  %p369_p5 = scmp.lt.s32.totalorder (!%p320_p3), %s2311_s12, 1 }
   0x9   : > { %s2818_s16 = smov (%p34_p4, %s2816_s16), 0  ;;  %323 = sbr.rel (%p320_p3) target bundleno = 1148 (0x47c), region = 56 }
   0xa   : > { %p371_p6 = scmp.lt.s32.totalorder (!%p320_p3), %s1732_s17, 31  ;;  %p1740_p7 = scmp.ne.s32.totalorder (!%p320_p3), %s2307_s11, 0 }
  0x10   : > { %s2820_s12 = smov (!%p369_p5, %s2311_s12), 1  ;;  %s2822_s17 = smov (!%p371_p6, %s1732_s17), 31 }
  0x11   : > { %s1733_s18 = sshll.u32 %s2820_s12, 5  ;;  %s1818_s19 = sshll.u32 %s2820_s12, 8  ;;  %v429_v0 = vld [vmem:[%s2803_s4] sm:$0xff] (!%p1740_p7)  ;;  %v430_v1 = vld [vmem:[%s2803_s4 + $0x8] sm:$0xff] (!%p1740_p7)  ;;  %vm438_vm0 = vcmask (!%p1740_p7), 130048  }
  0x12   : > { %s374_s20 = sadd.s32 %s1733_s18, %s2822_s17  ;;  %s2411_s23 = scalar_lea.vmem %s2801_s2, %s1818_s19  ;;  %v760_v2 = vld [vmem:[%s2804_s5] sm:$0xff] (!%p1740_p7)  ;;  %v2121_v3 = vpack.c.bf16 (!%p1740_p7), %v430_v1, %v429_v0  ;;  %v761_v4 = vld [vmem:[%s2804_s5 + $0x8] sm:$0xff] (!%p1740_p7) }
  0x13   : > { %s1734_s24 = sshll.u32 %s374_s20, 3  ;;  %396 = sbr.rel (%p1740_p7) target bundleno = 301 (0x12d), region = 60  ;;  %v397_v5 = vld [vmem:[%s2411_s23] sm:$0xff] (!%p1740_p7)  ;;  %v2125_v6 = vpack.c.bf16 (!%p1740_p7), %v761_v4, %v760_v2  ;;  %v398_v7 = vld [vmem:[%s2411_s23 + $0x8] sm:$0xff] (!%p1740_p7)  ;;  %v399_v8 = vld [vmem:[%s2411_s23 + $0x10] sm:$0xff] (!%p1740_p7) }
  0x14   : > { %s2416_s27 = scalar_lea.vmem %s2800_s1, %s1734_s24  ;;  %s2421_s30 = scalar_lea.vmem %s2808_s9, %s1734_s24  ;;  %2005 = vmatprep.mubr.msk.f32.mxu0 (!%p1740_p7), %vm438_vm0, %v397_v5  ;;  %2057 = vmatprep.mubr.msk.f32.mxu1 (!%p1740_p7), %vm438_vm0, %v397_v5  ;;  %v400_v9 = vld [vmem:[%s2411_s23 + $0x18] sm:$0xff] (!%p1740_p7)  ;;  %v401_v10 = vld [vmem:[%s2411_s23 + $0x20] sm:$0xff] (!%p1740_p7)  ;;  %v402_v11 = vld [vmem:[%s2411_s23 + $0x28] sm:$0xff] (!%p1740_p7) }
  0x15   : > { %2122 = vmatprep.subr.bf16.mxu0 (!%p1740_p7), %v2121_v3  ;;  %2126 = vmatprep.subr.bf16.mxu1 (!%p1740_p7), %v2125_v6  ;;  %v403_v12 = vld [vmem:[%s2411_s23 + $0x30] sm:$0xff] (!%p1740_p7)  ;;  %v404_v13 = vld [vmem:[%s2411_s23 + $0x38] sm:$0xff] (!%p1740_p7)  ;;  %v405_v14 = vld [vmem:[%s2411_s23 + $0x40] sm:$0xff] (!%p1740_p7) }
  0x16   : > { %2124 = vmatpush3.bf16.msra.mxu0 (!%p1740_p7), %v2121_v3  ;;  %2128 = vmatpush3.bf16.msra.mxu1 (!%p1740_p7), %v2125_v6  ;;  %v406_v15 = vld [vmem:[%s2411_s23 + $0x48] sm:$0xff] (!%p1740_p7)  ;;  %v407_v16 = vld [vmem:[%s2411_s23 + $0x50] sm:$0xff] (!%p1740_p7)  ;;  %v408_v17 = vld [vmem:[%s2411_s23 + $0x58] sm:$0xff] (!%p1740_p7) }
  0x17   : > { %v409_v18 = vld [vmem:[%s2411_s23 + $0x60] sm:$0xff] (!%p1740_p7)  ;;  %v410_v19 = vld [vmem:[%s2411_s23 + $0x68] sm:$0xff] (!%p1740_p7)  ;;  %v411_v20 = vld [vmem:[%s2411_s23 + $0x70] sm:$0xff] (!%p1740_p7) }
  0x18   : > { %v412_v21 = vld [vmem:[%s2411_s23 + $0x78] sm:$0xff] (!%p1740_p7)  ;;  %v413_v22 = vld [vmem:[%s2411_s23 + $0x80] sm:$0xff] (!%p1740_p7)  ;;  %v414_v23 = vld [vmem:[%s2411_s23 + $0x88] sm:$0xff] (!%p1740_p7) }
  0x19   : > { %2006 = vmatmul.mubr.msk.f32.vlgmr.msra.gmra.mrb[0].mxu0 (!%p1740_p7), %vm438_vm0, %v398_v7  ;;  %2058 = vmatmul.mubr.msk.f32.vlgmr.msra.gmra.mrb[0].mxu1 (!%p1740_p7), %vm438_vm0, %v398_v7  ;;  %v415_v24 = vld [vmem:[%s2411_s23 + $0x90] sm:$0xff] (!%p1740_p7)  ;;  %v416_v25 = vld [vmem:[%s2411_s23 + $0x98] sm:$0xff] (!%p1740_p7)  ;;  %v417_v26 = vld [vmem:[%s2411_s23 + $0xa0] sm:$0xff] (!%p1740_p7) }
  0x1a   : > { %2008 = vmatprep.mubr.msk.f32.mxu0 %vm438_vm0, %v399_v8  ;;  %2060 = vmatprep.mubr.msk.f32.mxu1 %vm438_vm0, %v399_v8  ;;  %v418_v27 = vld [vmem:[%s2411_s23 + $0xa8] sm:$0xff]  ;;  %v419_v28 = vld [vmem:[%s2411_s23 + $0xb0] sm:$0xff]  ;;  %v420_v29 = vld [vmem:[%s2411_s23 + $0xb8] sm:$0xff] }
  0x1b   : > { %v421_v30 = vld [vmem:[%s2411_s23 + $0xc0] sm:$0xff]  ;;  %v422_v31 = vld [vmem:[%s2411_s23 + $0xc8] sm:$0xff]  ;;  %v423_v32 = vld [vmem:[%s2411_s23 + $0xd0] sm:$0xff] }
  0x1c   : > { %v424_v33 = vld [vmem:[%s2411_s23 + $0xd8] sm:$0xff]  ;;  %v425_v34 = vld [vmem:[%s2411_s23 + $0xe0] sm:$0xff]  ;;  %v426_v35 = vld [vmem:[%s2411_s23 + $0xe8] sm:$0xff] }
  0x1d   : > { %2009 = vmatmul.mubr.msk.f32.gmra.mrb[2].mxu0 %vm438_vm0, %v400_v9  ;;  %2061 = vmatmul.mubr.msk.f32.gmra.mrb[2].mxu1 %vm438_vm0, %v400_v9  ;;  %v427_v36 = vld [vmem:[%s2411_s23 + $0xf0] sm:$0xff]  ;;  %v428_v37 = vld [vmem:[%s2411_s23 + $0xf8] sm:$0xff]  ;;  %v2534_v38 = vld [vmem:[%s2806_s7] ss:$0 sm:$0xff] }
  0x1e   : > { %2011 = vmatprep.mubr.msk.f32.mxu0 %vm438_vm0, %v401_v10  ;;  %2063 = vmatprep.mubr.msk.f32.mxu1 %vm438_vm0, %v401_v10  ;;  %v2539_v39 = vld [vmem:[%s2807_s8] ss:$0 sm:$0xff] }
  0x21   : > { %2012 = vmatmul.mubr.msk.f32.gmra.mrb[4].mxu0 %vm438_vm0, %v402_v11  ;;  %2064 = vmatmul.mubr.msk.f32.gmra.mrb[4].mxu1 %vm438_vm0, %v402_v11 }
  0x22   : > { %2014 = vmatprep.mubr.msk.f32.mxu0 %vm438_vm0, %v403_v12  ;;  %2066 = vmatprep.mubr.msk.f32.mxu1 %vm438_vm0, %v403_v12 }
  0x25   : > { %2015 = vmatmul.mubr.msk.f32.gmra.mrb[6].mxu0 %vm438_vm0, %v404_v13  ;;  %2067 = vmatmul.mubr.msk.f32.gmra.mrb[6].mxu1 %vm438_vm0, %v404_v13 }
  0x26   : > { %2017 = vmatprep.mubr.msk.f32.mxu0 %vm438_vm0, %v405_v14  ;;  %2069 = vmatprep.mubr.msk.f32.mxu1 %vm438_vm0, %v405_v14 }
  0x29   : > { %2018 = vmatmul.mubr.msk.f32.gmra.mrb[8].mxu0 %vm438_vm0, %v406_v15  ;;  %2070 = vmatmul.mubr.msk.f32.gmra.mrb[8].mxu1 %vm438_vm0, %v406_v15 }
  0x2a   : > { %2020 = vmatprep.mubr.msk.f32.mxu0 %vm438_vm0, %v407_v16  ;;  %2072 = vmatprep.mubr.msk.f32.mxu1 %vm438_vm0, %v407_v16 }
  0x2d   : > { %2021 = vmatmul.mubr.msk.f32.gmra.mrb[10].mxu0 %vm438_vm0, %v408_v17  ;;  %2073 = vmatmul.mubr.msk.f32.gmra.mrb[10].mxu1 %vm438_vm0, %v408_v17 }
  0x2e   : > { %2023 = vmatprep.mubr.msk.f32.mxu0 %vm438_vm0, %v409_v18  ;;  %2075 = vmatprep.mubr.msk.f32.mxu1 %vm438_vm0, %v409_v18 }
  0x31   : > { %2024 = vmatmul.mubr.msk.f32.gmra.mrb[12].mxu0 %vm438_vm0, %v410_v19  ;;  %2076 = vmatmul.mubr.msk.f32.gmra.mrb[12].mxu1 %vm438_vm0, %v410_v19 }
  0x32   : > { %2026 = vmatprep.mubr.msk.f32.mxu0 %vm438_vm0, %v411_v20  ;;  %2078 = vmatprep.mubr.msk.f32.mxu1 %vm438_vm0, %v411_v20 }
  0x35   : > { %2027 = vmatmul.mubr.msk.f32.gmra.mrb[14].mxu0 %vm438_vm0, %v412_v21  ;;  %2079 = vmatmul.mubr.msk.f32.gmra.mrb[14].mxu1 %vm438_vm0, %v412_v21 }
  0x36   : > { %2029 = vmatprep.mubr.msk.f32.mxu0 %vm438_vm0, %v413_v22  ;;  %2081 = vmatprep.mubr.msk.f32.mxu1 %vm438_vm0, %v413_v22 }
  0x39   : > { %2030 = vmatmul.mubr.msk.f32.gmra.mrb[16].mxu0 %vm438_vm0, %v414_v23  ;;  %2082 = vmatmul.mubr.msk.f32.gmra.mrb[16].mxu1 %vm438_vm0, %v414_v23 }
  0x3a   : > { %2032 = vmatprep.mubr.msk.f32.mxu0 %vm438_vm0, %v415_v24  ;;  %2084 = vmatprep.mubr.msk.f32.mxu1 %vm438_vm0, %v415_v24 }
  0x3d   : > { %2033 = vmatmul.mubr.msk.f32.gmra.mrb[18].mxu0 %vm438_vm0, %v416_v25  ;;  %2085 = vmatmul.mubr.msk.f32.gmra.mrb[18].mxu1 %vm438_vm0, %v416_v25 }
  0x3e   : > { %2035 = vmatprep.mubr.msk.f32.mxu0 %vm438_vm0, %v417_v26  ;;  %2087 = vmatprep.mubr.msk.f32.mxu1 %vm438_vm0, %v417_v26 }
  0x41   : > { %2036 = vmatmul.mubr.msk.f32.gmra.mrb[20].mxu0 %vm438_vm0, %v418_v27  ;;  %2088 = vmatmul.mubr.msk.f32.gmra.mrb[20].mxu1 %vm438_vm0, %v418_v27 }
  0x42   : > { %2038 = vmatprep.mubr.msk.f32.mxu0 %vm438_vm0, %v419_v28  ;;  %2090 = vmatprep.mubr.msk.f32.mxu1 %vm438_vm0, %v419_v28 }
  0x45   : > { %2039 = vmatmul.mubr.msk.f32.gmra.mrb[22].mxu0 %vm438_vm0, %v420_v29  ;;  %2091 = vmatmul.mubr.msk.f32.gmra.mrb[22].mxu1 %vm438_vm0, %v420_v29 }
  0x46   : > { %2041 = vmatprep.mubr.msk.f32.mxu0 %vm438_vm0, %v421_v30  ;;  %2093 = vmatprep.mubr.msk.f32.mxu1 %vm438_vm0, %v421_v30 }
  0x49   : > { %2042 = vmatmul.mubr.msk.f32.gmra.mrb[24].mxu0 %vm438_vm0, %v422_v31  ;;  %2094 = vmatmul.mubr.msk.f32.gmra.mrb[24].mxu1 %vm438_vm0, %v422_v31 }
  0x4a   : > { %2044 = vmatprep.mubr.msk.f32.mxu0 %vm438_vm0, %v423_v32  ;;  %2096 = vmatprep.mubr.msk.f32.mxu1 %vm438_vm0, %v423_v32 }
  0x4d   : > { %2045 = vmatmul.mubr.msk.f32.gmra.mrb[26].mxu0 %vm438_vm0, %v424_v33  ;;  %2097 = vmatmul.mubr.msk.f32.gmra.mrb[26].mxu1 %vm438_vm0, %v424_v33 }
  0x4e   : > { %2047 = vmatprep.mubr.msk.f32.mxu0 %vm438_vm0, %v425_v34  ;;  %2099 = vmatprep.mubr.msk.f32.mxu1 %vm438_vm0, %v425_v34 }
  0x51   : > { %2048 = vmatmul.mubr.msk.f32.gmra.mrb[28].mxu0 %vm438_vm0, %v426_v35  ;;  %2100 = vmatmul.mubr.msk.f32.gmra.mrb[28].mxu1 %vm438_vm0, %v426_v35 }
  0x52   : > { %2050 = vmatprep.mubr.msk.f32.mxu0 %vm438_vm0, %v427_v36  ;;  %2102 = vmatprep.mubr.msk.f32.mxu1 %vm438_vm0, %v427_v36 }
  0x55   : > { %2051 = vmatmul.mubr.msk.f32.gmra.mrb[30].mxu0 %vm438_vm0, %v428_v37  ;;  %2103 = vmatmul.mubr.msk.f32.gmra.mrb[30].mxu1 %vm438_vm0, %v428_v37 }
  0xec   : > { %v2007_v40 = vpop.f32.mrb[0].mxu0  ;;  %v2059_v42 = vpop.f32.mrb[0].mxu1 }
  0xed   : > { %v607_v41 = vadd.f32 %v2007_v40, %v2534_v38  ;;  %v601_v43 = vpop.f32.mrb[1].mxu0  ;;  %v841_v44 = vadd.f32 %v2059_v42, %v2539_v39  ;;  %v835_v46 = vpop.f32.mrb[1].mxu1 }
  0xee   : > { %v602_v45 = vadd.f32 %v2534_v38, %v601_v43  ;;  %v836_v47 = vadd.f32 %v2539_v39, %v835_v46 }
  0xef   : > { %995 = vst [vmem:[#allocation2 + $0x8] sm:$0xff] %v607_v41  ;;  %1027 = vst.msk [vmem:[#allocation3 + $0x8] sm:$0xff] %vm438_vm0, %v841_v44 }
  0xf0   : > { %994 = vst [vmem:[#allocation2] sm:$0xff] %v602_v45  ;;  %v2010_v48 = vpop.f32.mrb[2].mxu0  ;;  %1026 = vst.msk [vmem:[#allocation3] sm:$0xff] %vm438_vm0, %v836_v47  ;;  %v2062_v50 = vpop.f32.mrb[2].mxu1 }
  0xf1   : > { %v617_v49 = vadd.f32 %v2010_v48, %v2534_v38  ;;  %v611_v51 = vpop.f32.mrb[3].mxu0  ;;  %v851_v52 = vadd.f32 %v2062_v50, %v2539_v39  ;;  %v845_v54 = vpop.f32.mrb[3].mxu1 }
  0xf2   : > { %v612_v53 = vadd.f32 %v2534_v38, %v611_v51  ;;  %v846_v55 = vadd.f32 %v2539_v39, %v845_v54 }
  0xf3   : > { %997 = vst [vmem:[#allocation2 + $0x18] sm:$0xff] %v617_v49  ;;  %1029 = vst.msk [vmem:[#allocation3 + $0x18] sm:$0xff] %vm438_vm0, %v851_v52 }
  0xf4   : > { %996 = vst [vmem:[#allocation2 + $0x10] sm:$0xff] %v612_v53  ;;  %v2013_v56 = vpop.f32.mrb[4].mxu0  ;;  %1028 = vst.msk [vmem:[#allocation3 + $0x10] sm:$0xff] %vm438_vm0, %v846_v55  ;;  %v2065_v58 = vpop.f32.mrb[4].mxu1 }
  0xf5   : > { %v627_v57 = vadd.f32 %v2013_v56, %v2534_v38  ;;  %v621_v59 = vpop.f32.mrb[5].mxu0  ;;  %v861_v60 = vadd.f32 %v2065_v58, %v2539_v39  ;;  %v855_v62 = vpop.f32.mrb[5].mxu1 }
  0xf6   : > { %v622_v61 = vadd.f32 %v2534_v38, %v621_v59  ;;  %v856_v63 = vadd.f32 %v2539_v39, %v855_v62 }
  0xf7   : > { %999 = vst [vmem:[#allocation2 + $0x28] sm:$0xff] %v627_v57  ;;  %1031 = vst.msk [vmem:[#allocation3 + $0x28] sm:$0xff] %vm438_vm0, %v861_v60 }
  0xf8   : > { %998 = vst [vmem:[#allocation2 + $0x20] sm:$0xff] %v622_v61  ;;  %v2016_v0 = vpop.f32.mrb[6].mxu0  ;;  %1030 = vst.msk [vmem:[#allocation3 + $0x20] sm:$0xff] %vm438_vm0, %v856_v63  ;;  %v2068_v2 = vpop.f32.mrb[6].mxu1 }
  0xf9   : > { %v637_v1 = vadd.f32 %v2016_v0, %v2534_v38  ;;  %v631_v3 = vpop.f32.mrb[7].mxu0  ;;  %v871_v4 = vadd.f32 %v2068_v2, %v2539_v39  ;;  %v865_v6 = vpop.f32.mrb[7].mxu1 }
  0xfa   : > { %v632_v5 = vadd.f32 %v2534_v38, %v631_v3  ;;  %v866_v7 = vadd.f32 %v2539_v39, %v865_v6 }
  0xfb   : > { %1001 = vst [vmem:[#allocation2 + $0x38] sm:$0xff] %v637_v1  ;;  %1033 = vst.msk [vmem:[#allocation3 + $0x38] sm:$0xff] %vm438_vm0, %v871_v4 }
  0xfc   : > { %1000 = vst [vmem:[#allocation2 + $0x30] sm:$0xff] %v632_v5  ;;  %v2019_v8 = vpop.f32.mrb[8].mxu0  ;;  %1032 = vst.msk [vmem:[#allocation3 + $0x30] sm:$0xff] %vm438_vm0, %v866_v7  ;;  %v2071_v10 = vpop.f32.mrb[8].mxu1 }
  0xfd   : > { %v647_v9 = vadd.f32 %v2019_v8, %v2534_v38  ;;  %v641_v11 = vpop.f32.mrb[9].mxu0  ;;  %v881_v12 = vadd.f32 %v2071_v10, %v2539_v39  ;;  %v875_v14 = vpop.f32.mrb[9].mxu1 }
  0xfe   : > { %v642_v13 = vadd.f32 %v2534_v38, %v641_v11  ;;  %v876_v15 = vadd.f32 %v2539_v39, %v875_v14 }
  0xff   : > { %1003 = vst [vmem:[#allocation2 + $0x48] sm:$0xff] %v647_v9  ;;  %1035 = vst.msk [vmem:[#allocation3 + $0x48] sm:$0xff] %vm438_vm0, %v881_v12 }
 0x100   : > { %1002 = vst [vmem:[#allocation2 + $0x40] sm:$0xff] %v642_v13  ;;  %v2022_v16 = vpop.f32.mrb[10].mxu0  ;;  %1034 = vst.msk [vmem:[#allocation3 + $0x40] sm:$0xff] %vm438_vm0, %v876_v15  ;;  %v2074_v18 = vpop.f32.mrb[10].mxu1 }
 0x101   : > { %v657_v17 = vadd.f32 %v2022_v16, %v2534_v38  ;;  %v651_v19 = vpop.f32.mrb[11].mxu0  ;;  %v891_v20 = vadd.f32 %v2074_v18, %v2539_v39  ;;  %v885_v22 = vpop.f32.mrb[11].mxu1 }
 0x102   : > { %v652_v21 = vadd.f32 %v2534_v38, %v651_v19  ;;  %v886_v23 = vadd.f32 %v2539_v39, %v885_v22 }
 0x103   : > { %1005 = vst [vmem:[#allocation2 + $0x58] sm:$0xff] %v657_v17  ;;  %1037 = vst.msk [vmem:[#allocation3 + $0x58] sm:$0xff] %vm438_vm0, %v891_v20 }
 0x104   : > { %1004 = vst [vmem:[#allocation2 + $0x50] sm:$0xff] %v652_v21  ;;  %v2025_v24 = vpop.f32.mrb[12].mxu0  ;;  %1036 = vst.msk [vmem:[#allocation3 + $0x50] sm:$0xff] %vm438_vm0, %v886_v23  ;;  %v2077_v26 = vpop.f32.mrb[12].mxu1 }
 0x105   : > { %v667_v25 = vadd.f32 %v2025_v24, %v2534_v38  ;;  %v661_v27 = vpop.f32.mrb[13].mxu0  ;;  %v901_v28 = vadd.f32 %v2077_v26, %v2539_v39  ;;  %v895_v30 = vpop.f32.mrb[13].mxu1 }
 0x106   : > { %v662_v29 = vadd.f32 %v2534_v38, %v661_v27  ;;  %v896_v31 = vadd.f32 %v2539_v39, %v895_v30 }
 0x107   : > { %1007 = vst [vmem:[#allocation2 + $0x68] sm:$0xff] %v667_v25  ;;  %1039 = vst.msk [vmem:[#allocation3 + $0x68] sm:$0xff] %vm438_vm0, %v901_v28 }
 0x108   : > { %1006 = vst [vmem:[#allocation2 + $0x60] sm:$0xff] %v662_v29  ;;  %v2028_v32 = vpop.f32.mrb[14].mxu0  ;;  %1038 = vst.msk [vmem:[#allocation3 + $0x60] sm:$0xff] %vm438_vm0, %v896_v31  ;;  %v2080_v34 = vpop.f32.mrb[14].mxu1 }
 0x109   : > { %v677_v33 = vadd.f32 %v2028_v32, %v2534_v38  ;;  %v671_v35 = vpop.f32.mrb[15].mxu0  ;;  %v911_v36 = vadd.f32 %v2080_v34, %v2539_v39  ;;  %v905_v40 = vpop.f32.mrb[15].mxu1 }
 0x10a   : > { %v672_v37 = vadd.f32 %v2534_v38, %v671_v35  ;;  %v906_v41 = vadd.f32 %v2539_v39, %v905_v40 }
 0x10b   : > { %1009 = vst [vmem:[#allocation2 + $0x78] sm:$0xff] %v677_v33  ;;  %1041 = vst.msk [vmem:[#allocation3 + $0x78] sm:$0xff] %vm438_vm0, %v911_v36 }
 0x10c   : > { %1008 = vst [vmem:[#allocation2 + $0x70] sm:$0xff] %v672_v37  ;;  %v2031_v42 = vpop.f32.mrb[16].mxu0  ;;  %1040 = vst.msk [vmem:[#allocation3 + $0x70] sm:$0xff] %vm438_vm0, %v906_v41  ;;  %v2083_v44 = vpop.f32.mrb[16].mxu1 }
 0x10d   : > { %v687_v43 = vadd.f32 %v2031_v42, %v2534_v38  ;;  %v681_v45 = vpop.f32.mrb[17].mxu0  ;;  %v921_v46 = vadd.f32 %v2083_v44, %v2539_v39  ;;  %v915_v48 = vpop.f32.mrb[17].mxu1 }
 0x10e   : > { %v682_v47 = vadd.f32 %v2534_v38, %v681_v45  ;;  %v916_v49 = vadd.f32 %v2539_v39, %v915_v48 }
 0x10f   : > { %1011 = vst [vmem:[#allocation2 + $0x88] sm:$0xff] %v687_v43  ;;  %1043 = vst.msk [vmem:[#allocation3 + $0x88] sm:$0xff] %vm438_vm0, %v921_v46 }
 0x110   : > { %1010 = vst [vmem:[#allocation2 + $0x80] sm:$0xff] %v682_v47  ;;  %v2034_v50 = vpop.f32.mrb[18].mxu0  ;;  %1042 = vst.msk [vmem:[#allocation3 + $0x80] sm:$0xff] %vm438_vm0, %v916_v49  ;;  %v2086_v52 = vpop.f32.mrb[18].mxu1 }
 0x111   : > { %v697_v51 = vadd.f32 %v2034_v50, %v2534_v38  ;;  %v691_v53 = vpop.f32.mrb[19].mxu0  ;;  %v931_v54 = vadd.f32 %v2086_v52, %v2539_v39  ;;  %v925_v56 = vpop.f32.mrb[19].mxu1 }
 0x112   : > { %v692_v55 = vadd.f32 %v2534_v38, %v691_v53  ;;  %v926_v57 = vadd.f32 %v2539_v39, %v925_v56 }
 0x113   : > { %1013 = vst [vmem:[#allocation2 + $0x98] sm:$0xff] %v697_v51  ;;  %1045 = vst.msk [vmem:[#allocation3 + $0x98] sm:$0xff] %vm438_vm0, %v931_v54 }
 0x114   : > { %1012 = vst [vmem:[#allocation2 + $0x90] sm:$0xff] %v692_v55  ;;  %v2037_v58 = vpop.f32.mrb[20].mxu0  ;;  %1044 = vst.msk [vmem:[#allocation3 + $0x90] sm:$0xff] %vm438_vm0, %v926_v57  ;;  %v2089_v60 = vpop.f32.mrb[20].mxu1 }
 0x115   : > { %v707_v59 = vadd.f32 %v2037_v58, %v2534_v38  ;;  %v701_v61 = vpop.f32.mrb[21].mxu0  ;;  %v941_v62 = vadd.f32 %v2089_v60, %v2539_v39  ;;  %v935_v0 = vpop.f32.mrb[21].mxu1 }
 0x116   : > { %v702_v63 = vadd.f32 %v2534_v38, %v701_v61  ;;  %v936_v1 = vadd.f32 %v2539_v39, %v935_v0 }
 0x117   : > { %1015 = vst [vmem:[#allocation2 + $0xa8] sm:$0xff] %v707_v59  ;;  %1047 = vst.msk [vmem:[#allocation3 + $0xa8] sm:$0xff] %vm438_vm0, %v941_v62 }
 0x118   : > { %1014 = vst [vmem:[#allocation2 + $0xa0] sm:$0xff] %v702_v63  ;;  %v2040_v2 = vpop.f32.mrb[22].mxu0  ;;  %1046 = vst.msk [vmem:[#allocation3 + $0xa0] sm:$0xff] %vm438_vm0, %v936_v1  ;;  %v2092_v4 = vpop.f32.mrb[22].mxu1 }
 0x119   : > { %v717_v3 = vadd.f32 %v2040_v2, %v2534_v38  ;;  %v711_v5 = vpop.f32.mrb[23].mxu0  ;;  %v951_v6 = vadd.f32 %v2092_v4, %v2539_v39  ;;  %v945_v8 = vpop.f32.mrb[23].mxu1 }
 0x11a   : > { %v712_v7 = vadd.f32 %v2534_v38, %v711_v5  ;;  %v946_v9 = vadd.f32 %v2539_v39, %v945_v8 }
 0x11b   : > { %1017 = vst [vmem:[#allocation2 + $0xb8] sm:$0xff] %v717_v3  ;;  %1049 = vst.msk [vmem:[#allocation3 + $0xb8] sm:$0xff] %vm438_vm0, %v951_v6 }
 0x11c   : > { %1016 = vst [vmem:[#allocation2 + $0xb0] sm:$0xff] %v712_v7  ;;  %v2043_v10 = vpop.f32.mrb[24].mxu0  ;;  %1048 = vst.msk [vmem:[#allocation3 + $0xb0] sm:$0xff] %vm438_vm0, %v946_v9  ;;  %v2095_v12 = vpop.f32.mrb[24].mxu1 }
 0x11d   : > { %v727_v11 = vadd.f32 %v2043_v10, %v2534_v38  ;;  %v721_v13 = vpop.f32.mrb[25].mxu0  ;;  %v961_v14 = vadd.f32 %v2095_v12, %v2539_v39  ;;  %v955_v16 = vpop.f32.mrb[25].mxu1 }
 0x11e   : > { %v722_v15 = vadd.f32 %v2534_v38, %v721_v13  ;;  %v956_v17 = vadd.f32 %v2539_v39, %v955_v16 }
 0x11f   : > { %1019 = vst [vmem:[#allocation2 + $0xc8] sm:$0xff] %v727_v11  ;;  %1051 = vst.msk [vmem:[#allocation3 + $0xc8] sm:$0xff] %vm438_vm0, %v961_v14 }
 0x120   : > { %1018 = vst [vmem:[#allocation2 + $0xc0] sm:$0xff] %v722_v15  ;;  %v2046_v18 = vpop.f32.mrb[26].mxu0  ;;  %1050 = vst.msk [vmem:[#allocation3 + $0xc0] sm:$0xff] %vm438_vm0, %v956_v17  ;;  %v2098_v20 = vpop.f32.mrb[26].mxu1 }
 0x121   : > { %v737_v19 = vadd.f32 %v2046_v18, %v2534_v38  ;;  %v731_v21 = vpop.f32.mrb[27].mxu0  ;;  %v971_v22 = vadd.f32 %v2098_v20, %v2539_v39  ;;  %v965_v24 = vpop.f32.mrb[27].mxu1 }
 0x122   : > { %v732_v23 = vadd.f32 %v2534_v38, %v731_v21  ;;  %v966_v25 = vadd.f32 %v2539_v39, %v965_v24 }
 0x123   : > { %1021 = vst [vmem:[#allocation2 + $0xd8] sm:$0xff] %v737_v19  ;;  %1053 = vst.msk [vmem:[#allocation3 + $0xd8] sm:$0xff] %vm438_vm0, %v971_v22 }
 0x124   : > { %1020 = vst [vmem:[#allocation2 + $0xd0] sm:$0xff] %v732_v23  ;;  %v2049_v26 = vpop.f32.mrb[28].mxu0  ;;  %1052 = vst.msk [vmem:[#allocation3 + $0xd0] sm:$0xff] %vm438_vm0, %v966_v25  ;;  %v2101_v28 = vpop.f32.mrb[28].mxu1 }
 0x125   : > { %v747_v27 = vadd.f32 %v2049_v26, %v2534_v38  ;;  %v741_v29 = vpop.f32.mrb[29].mxu0  ;;  %v981_v30 = vadd.f32 %v2101_v28, %v2539_v39  ;;  %v975_v32 = vpop.f32.mrb[29].mxu1 }
 0x126   : > { %v742_v31 = vadd.f32 %v2534_v38, %v741_v29  ;;  %v976_v33 = vadd.f32 %v2539_v39, %v975_v32 }
 0x127   : > { %1023 = vst [vmem:[#allocation2 + $0xe8] sm:$0xff] %v747_v27  ;;  %1055 = vst.msk [vmem:[#allocation3 + $0xe8] sm:$0xff] %vm438_vm0, %v981_v30 }
 0x128   : > { %1022 = vst [vmem:[#allocation2 + $0xe0] sm:$0xff] %v742_v31  ;;  %v2052_v34 = vpop.f32.mrb[30].mxu0  ;;  %1054 = vst.msk [vmem:[#allocation3 + $0xe0] sm:$0xff] %vm438_vm0, %v976_v33  ;;  %v2104_v36 = vpop.f32.mrb[30].mxu1 }
 0x129   : > { %v757_v35 = vadd.f32 %v2052_v34, %v2534_v38  ;;  %v751_v37 = vpop.f32.mrb[31].mxu0  ;;  %v991_v40 = vadd.f32 %v2104_v36, %v2539_v39  ;;  %v985_v42 = vpop.f32.mrb[31].mxu1 }
 0x12a   : > { %v752_v41 = vadd.f32 %v2534_v38, %v751_v37  ;;  %v986_v43 = vadd.f32 %v2539_v39, %v985_v42 }
 0x12b   : > { %1025 = vst [vmem:[#allocation2 + $0xf8] sm:$0xff] %v757_v35  ;;  %1057 = vst.msk [vmem:[#allocation3 + $0xf8] sm:$0xff] %vm438_vm0, %v991_v40 }
 0x12c   : > { %1024 = vst [vmem:[#allocation2 + $0xf0] sm:$0xff] %v752_v41  ;;  %1056 = vst.msk [vmem:[#allocation3 + $0xf0] sm:$0xff] %vm438_vm0, %v986_v43 }
 0x12d PF: > { %v1066_v44 = vld [vmem:[%s2802_s3] sm:$0xff]  ;;  %v1067_v38 = vld [vmem:[%s2802_s3 + $0x8] sm:$0xff]  ;;  %vm1075_vm1 = vcmask 130048   ;;  %v1223_v52 = vld [vmem:[#allocation2 + $0x90] sm:$0xff]  ;;  %s1599_s17 = sld [smem:[#allocation4]] }
 0x12e   : > { %v2644_v45 = vld [vmem:[%s2416_s27] sm:$0xff]  ;;  %v2129_v39 = vpack.c.bf16 %v1067_v38, %v1066_v44  ;;  %v2649_v46 = vld [vmem:[%s2416_s27 + $0x8] sm:$0xff]  ;;  %v2652_v53 = vld [vmem:[%s2416_s27 + $0x10] sm:$0xff] }
 0x12f   : > { %2109 = vmatprep.mubr.msk.f32.mxu0 %vm1075_vm1, %v2644_v45  ;;  %v1221_v47 = vld [vmem:[#allocation2 + $0x80] sm:$0xff]  ;;  %v1222_v48 = vld [vmem:[#allocation2 + $0x88] sm:$0xff]  ;;  %v1224_v55 = vld [vmem:[#allocation2 + $0x98] sm:$0xff] }
 0x130   : > { %2130 = vmatprep.subr.bf16.mxu0 %v2129_v39  ;;  %v2133_v49 = vpack.c.bf16 %v1222_v48, %v1221_v47  ;;  %v1205_v50 = vld [vmem:[#allocation2] sm:$0xff]  ;;  %v1206_v51 = vld [vmem:[#allocation2 + $0x8] sm:$0xff]  ;;  %v2137_v56 = vpack.c.bf16 %v1224_v55, %v1223_v52  ;;  %v2659_v57 = vld [vmem:[%s2416_s27 + $0x18] sm:$0xff] }
 0x131   : > { %2132 = vmatpush3.bf16.msra.mxu0 %v2129_v39  ;;  %v2135_v54 = vpack.c.bf16 %v1206_v51, %v1205_v50  ;;  %v1207_v58 = vld [vmem:[#allocation2 + $0x10] sm:$0xff]  ;;  %v1208_v59 = vld [vmem:[#allocation2 + $0x18] sm:$0xff]  ;;  %v2662_v60 = vld [vmem:[%s2416_s27 + $0x20] sm:$0xff] }
 0x132   : > { %2134 = vmatprep.subr.bf16.mxu1 %v2133_v49  ;;  %v1225_v61 = vld [vmem:[#allocation2 + $0xa0] sm:$0xff]  ;;  %v1226_v62 = vld [vmem:[#allocation2 + $0xa8] sm:$0xff]  ;;  %v2139_v63 = vpack.c.bf16 %v1208_v59, %v1207_v58  ;;  %v2672_v2 = vld [vmem:[%s2416_s27 + $0x30] sm:$0xff] }
 0x133   : > { %2136 = vmatpush3.bf16.xpose.msra.mxu1 %v2135_v54  ;;  %v2669_v0 = vld [vmem:[%s2416_s27 + $0x28] sm:$0xff]  ;;  %v2141_v1 = vpack.c.bf16 %v1226_v62, %v1225_v61  ;;  %v2679_v3 = vld [vmem:[%s2416_s27 + $0x38] sm:$0xff]  ;;  %v1209_v4 = vld [vmem:[#allocation2 + $0x20] sm:$0xff] }
 0x134   : > { %2110 = vmatmul.mubr.msk.f32.vlgmr.msra.gmra.mrb[0].mxu0 %vm1075_vm1, %v2649_v46  ;;  %2138 = vmatprep.subr.bf16.mxu1 %v2137_v56  ;;  %v1210_v5 = vld [vmem:[#allocation2 + $0x28] sm:$0xff]  ;;  %v1227_v6 = vld [vmem:[#allocation2 + $0xb0] sm:$0xff]  ;;  %v1228_v7 = vld [vmem:[#allocation2 + $0xb8] sm:$0xff] }
 0x135   : > { %2112 = vmatprep.mubr.msk.f32.mxu0 %vm1075_vm1, %v2652_v53  ;;  %v2143_v8 = vpack.c.bf16 %v1210_v5, %v1209_v4  ;;  %v2145_v9 = vpack.c.bf16 %v1228_v7, %v1227_v6  ;;  %v1211_v10 = vld [vmem:[#allocation2 + $0x30] sm:$0xff]  ;;  %v1212_v11 = vld [vmem:[#allocation2 + $0x38] sm:$0xff]  ;;  %v1229_v12 = vld [vmem:[#allocation2 + $0xc0] sm:$0xff] }
 0x136   : > { %v1230_v13 = vld [vmem:[#allocation2 + $0xc8] sm:$0xff]  ;;  %v2147_v14 = vpack.c.bf16 %v1212_v11, %v1211_v10  ;;  %v1213_v16 = vld [vmem:[#allocation2 + $0x40] sm:$0xff]  ;;  %v1231_v18 = vld [vmem:[#allocation2 + $0xd0] sm:$0xff] }
 0x137   : > { %v2149_v15 = vpack.c.bf16 %v1230_v13, %v1229_v12  ;;  %v1214_v17 = vld [vmem:[#allocation2 + $0x48] sm:$0xff]  ;;  %v1232_v19 = vld [vmem:[#allocation2 + $0xd8] sm:$0xff]  ;;  %v1215_v22 = vld [vmem:[#allocation2 + $0x50] sm:$0xff] }
 0x138   : > { %2113 = vmatmul.mubr.msk.f32.gmra.mrb[2].mxu0 %vm1075_vm1, %v2659_v57  ;;  %v2151_v20 = vpack.c.bf16 %v1214_v17, %v1213_v16  ;;  %v2153_v21 = vpack.c.bf16 %v1232_v19, %v1231_v18  ;;  %v1216_v23 = vld [vmem:[#allocation2 + $0x58] sm:$0xff]  ;;  %v1233_v24 = vld [vmem:[#allocation2 + $0xe0] sm:$0xff]  ;;  %v1234_v25 = vld [vmem:[#allocation2 + $0xe8] sm:$0xff] }
 0x139   : > { %2115 = vmatprep.mubr.msk.f32.mxu0 %vm1075_vm1, %v2662_v60  ;;  %v2155_v26 = vpack.c.bf16 %v1216_v23, %v1215_v22  ;;  %v2157_v27 = vpack.c.bf16 %v1234_v25, %v1233_v24  ;;  %v1217_v28 = vld [vmem:[#allocation2 + $0x60] sm:$0xff]  ;;  %v1218_v29 = vld [vmem:[#allocation2 + $0x68] sm:$0xff]  ;;  %v1235_v30 = vld [vmem:[#allocation2 + $0xf0] sm:$0xff] }
 0x13a   : > { %v1236_v31 = vld [vmem:[#allocation2 + $0xf8] sm:$0xff]  ;;  %v2159_v32 = vpack.c.bf16 %v1218_v29, %v1217_v28  ;;  %v1219_v34 = vld [vmem:[#allocation2 + $0x70] sm:$0xff]  ;;  %v1807_v37 = vld [vmem:[%s2805_s6] ss:$0 sm:$0xff] }
 0x13b   : > { %2140 = vmatpush3.bf16.xpose.msra.mxu1 %v2139_v63  ;;  %v2161_v33 = vpack.c.bf16 %v1236_v31, %v1235_v30  ;;  %v1220_v35 = vld [vmem:[#allocation2 + $0x78] sm:$0xff]  ;;  %v1462_v58 = vld [vmem:[#allocation3 + $0x80] sm:$0xff]  ;;  %v1463_v59 = vld [vmem:[#allocation3 + $0x88] sm:$0xff] }
 0x13c   : > { %2116 = vmatmul.mubr.msk.f32.gmra.mrb[4].mxu0 %vm1075_vm1, %v2669_v0  ;;  %2142 = vmatprep.subr.bf16.mxu1 %v2141_v1  ;;  %v2163_v36 = vpack.c.bf16 %v1220_v35, %v1219_v34  ;;  %v1446_v61 = vld [vmem:[#allocation3] sm:$0xff]  ;;  %v2165_v62 = vpack.c.bf16 %v1463_v59, %v1462_v58  ;;  %v1447_v63 = vld [vmem:[#allocation3 + $0x8] sm:$0xff]  ;;  %v1464_v1 = vld [vmem:[#allocation3 + $0x90] sm:$0xff] }
 0x13d   : > { %2118 = vmatprep.mubr.msk.f32.mxu0 %vm1075_vm1, %v2672_v2  ;;  %v1465_v4 = vld [vmem:[#allocation3 + $0x98] sm:$0xff]  ;;  %v2167_v5 = vpack.c.bf16 %v1447_v63, %v1446_v61  ;;  %v1448_v7 = vld [vmem:[#allocation3 + $0x10] sm:$0xff]  ;;  %v1467_v10 = vld [vmem:[#allocation3 + $0xa8] sm:$0xff] }
 0x13e   : > { %v2169_v6 = vpack.c.bf16 %v1465_v4, %v1464_v1  ;;  %2166 = vmatprep.subr.bf16.mxu0 %v2165_v62  ;;  %v1450_v13 = vld [vmem:[#allocation3 + $0x20] sm:$0xff]  ;;  %v1469_v16 = vld [vmem:[#allocation3 + $0xb8] sm:$0xff]  ;;  %v1452_v19 = vld [vmem:[#allocation3 + $0x30] sm:$0xff] }
 0x13f   : > { %2168 = vmatpush3.bf16.msra.mxu0 %v2167_v5  ;;  %v1470_v35 = vld [vmem:[#allocation3 + $0xc0] sm:$0xff]  ;;  %v1475_v58 = vld [vmem:[#allocation3 + $0xe8] sm:$0xff] }
 0x140   : > { %2119 = vmatmul.mubr.msk.f32.gmra.mrb[6].mxu0 %vm1075_vm1, %v2679_v3  ;;  %2170 = vmatprep.subr.bf16.mxu0 %v2169_v6  ;;  %v1458_v62 = vld [vmem:[#allocation3 + $0x60] sm:$0xff]  ;;  %v1459_v63 = vld [vmem:[#allocation3 + $0x68] sm:$0xff]  ;;  %v1476_v6 = vld [vmem:[#allocation3 + $0xf0] sm:$0xff] }
 0x141   : > { %v2191_v4 = vpack.c.bf16 %v1459_v63, %v1458_v62 }
 0x143   : > { %2144 = vmatpush3.bf16.xpose.msra.mxu1 %v2143_v8  ;;  %v1449_v8 = vld [vmem:[#allocation3 + $0x18] sm:$0xff] }
 0x144   : > { %2146 = vmatprep.subr.bf16.mxu1 %v2145_v9  ;;  %v1466_v9 = vld [vmem:[#allocation3 + $0xa0] sm:$0xff]  ;;  %v2171_v11 = vpack.c.bf16 %v1449_v8, %v1448_v7  ;;  %v1477_v7 = vld [vmem:[#allocation3 + $0xf8] sm:$0xff] }
 0x145   : > { %v2173_v12 = vpack.c.bf16 %v1467_v10, %v1466_v9  ;;  %v2193_v9 = vpack.c.bf16 %v1477_v7, %v1476_v6  ;;  %v1460_v10 = vld [vmem:[#allocation3 + $0x70] sm:$0xff] }
 0x146   : > { %2172 = vmatpush3.bf16.msra.mxu0 %v2171_v11  ;;  %v1461_v11 = vld [vmem:[#allocation3 + $0x78] sm:$0xff] }
 0x147   : > { %2174 = vmatprep.subr.bf16.mxu0 %v2173_v12 }
 0x14b   : > { %2148 = vmatpush3.bf16.xpose.msra.mxu1 %v2147_v14  ;;  %v1451_v14 = vld [vmem:[#allocation3 + $0x28] sm:$0xff] }
 0x14c   : > { %2150 = vmatprep.subr.bf16.mxu1 %v2149_v15  ;;  %v1468_v15 = vld [vmem:[#allocation3 + $0xb0] sm:$0xff]  ;;  %v2175_v17 = vpack.c.bf16 %v1451_v14, %v1450_v13  ;;  %v2195_v13 = vpack.c.bf16 %v1461_v11, %v1460_v10 }
 0x14d   : > { %v2177_v18 = vpack.c.bf16 %v1469_v16, %v1468_v15 }
 0x14e   : > { %2176 = vmatpush3.bf16.msra.mxu0 %v2175_v17 }
 0x14f   : > { %2178 = vmatprep.subr.bf16.mxu0 %v2177_v18 }
 0x153   : > { %2152 = vmatpush3.bf16.xpose.msra.mxu1 %v2151_v20  ;;  %v1453_v20 = vld [vmem:[#allocation3 + $0x38] sm:$0xff] }
 0x154   : > { %2154 = vmatprep.subr.bf16.mxu1 %v2153_v21  ;;  %v2179_v21 = vpack.c.bf16 %v1453_v20, %v1452_v19 }
 0x156   : > { %2180 = vmatpush3.bf16.msra.mxu0 %v2179_v21 }
 0x15b   : > { %2156 = vmatpush3.bf16.xpose.msra.mxu1 %v2155_v26 }
 0x15c   : > { %2158 = vmatprep.subr.bf16.mxu1 %v2157_v27 }
 0x163   : > { %2160 = vmatpush3.bf16.xpose.msra.mxu1 %v2159_v32 }
 0x164   : > { %2162 = vmatprep.subr.bf16.mxu1 %v2161_v33 }
 0x16b   : > { %2164 = vmatpush3.bf16.xpose.msra.mxu1 %v2163_v36  ;;  %v1471_v36 = vld [vmem:[#allocation3 + $0xc8] sm:$0xff] }
 0x207   : > { %v2111_v40 = vpop.f32.mrb[0].mxu0 }
 0x208   : > { %v1166_v41 = vpop.f32.mrb[1].mxu0  ;;  %v1172_v43 = vadd.f32 %v2111_v40, %v1807_v37  ;;  %v2181_v40 = vpack.c.bf16 %v1471_v36, %v1470_v35 }
 0x209   : > { %v1167_v42 = vadd.f32 %v1807_v37, %v1166_v41  ;;  %v1454_v41 = vld [vmem:[#allocation3 + $0x40] sm:$0xff] }
 0x20a   : > { %2182 = vmatprep.subr.bf16.mxu0 %v2181_v40 }
 0x20b   : > { %1929 = vmatprep.mubr.f32.mxu1 %v1167_v42  ;;  %v2114_v44 = vpop.f32.mrb[2].mxu0 }
 0x20c   : > { %1930 = vmatmul.mubr.f32.vlgmr.msra.gmra.mrb[0].mxu1 %v1167_v42  ;;  %v1176_v38 = vpop.f32.mrb[3].mxu0  ;;  %v1182_v49 = vadd.f32 %v2114_v44, %v1807_v37  ;;  %v1455_v42 = vld [vmem:[#allocation3 + $0x48] sm:$0xff] }
 0x20d   : > { %1931 = vmatprep.mubr.f32.mxu1 %v1172_v43  ;;  %v1177_v39 = vadd.f32 %v1807_v37, %v1176_v38  ;;  %v2183_v44 = vpack.c.bf16 %v1455_v42, %v1454_v41 }
 0x20f   : > { %v2117_v47 = vpop.f32.mrb[4].mxu0  ;;  %2184 = vmatpush3.bf16.msra.mxu0 %v2183_v44 }
 0x210   : > { %1932 = vmatmul.mubr.f32.gmra.mrb[2].mxu1 %v1172_v43  ;;  %v1186_v48 = vpop.f32.mrb[5].mxu0  ;;  %v1192_v54 = vadd.f32 %v2117_v47, %v1807_v37  ;;  %v1473_v47 = vld [vmem:[#allocation3 + $0xd8] sm:$0xff] }
 0x211   : > { %1933 = vmatprep.mubr.f32.mxu1 %v1177_v39  ;;  %v1187_v52 = vadd.f32 %v1807_v37, %v1186_v48 }
 0x213   : > { %v2120_v50 = vpop.f32.mrb[6].mxu0 }
 0x214   : > { %1934 = vmatmul.mubr.f32.gmra.mrb[4].mxu1 %v1177_v39  ;;  %v1196_v51 = vpop.f32.mrb[7].mxu0  ;;  %v1202_v56 = vadd.f32 %v2120_v50, %v1807_v37  ;;  %v1472_v39 = vld [vmem:[#allocation3 + $0xd0] sm:$0xff] }
 0x215   : > { %1935 = vmatprep.mubr.f32.mxu1 %v1182_v49  ;;  %v1197_v55 = vadd.f32 %v1807_v37, %v1196_v51  ;;  %v1456_v50 = vld [vmem:[#allocation3 + $0x50] sm:$0xff]  ;;  %v1457_v51 = vld [vmem:[#allocation3 + $0x58] sm:$0xff] }
 0x218   : > { %1936 = vmatmul.mubr.f32.gmra.mrb[6].mxu1 %v1182_v49  ;;  %v2185_v49 = vpack.c.bf16 %v1473_v47, %v1472_v39 }
 0x219   : > { %1937 = vmatprep.mubr.f32.mxu1 %v1187_v52 }
 0x21a   : > { %2186 = vmatprep.subr.bf16.mxu0 %v2185_v49 }
 0x21c   : > { %1938 = vmatmul.mubr.f32.gmra.mrb[8].mxu1 %v1187_v52 }
 0x21d   : > { %1939 = vmatprep.mubr.f32.mxu1 %v1192_v54 }
 0x220   : > { %1940 = vmatmul.mubr.f32.gmra.mrb[10].mxu1 %v1192_v54  ;;  %v2187_v54 = vpack.c.bf16 %v1457_v51, %v1456_v50 }
 0x221   : > { %1941 = vmatprep.mubr.f32.mxu1 %v1197_v55 }
 0x222   : > { %2188 = vmatpush3.bf16.msra.mxu0 %v2187_v54 }
 0x224   : > { %1942 = vmatmul.mubr.f32.gmra.mrb[12].mxu1 %v1197_v55 }
 0x225   : > { %1943 = vmatprep.mubr.f32.mxu1 %v1202_v56 }
 0x228   : > { %1944 = vmatmul.mubr.f32.gmra.mrb[14].mxu1 %v1202_v56  ;;  %v1474_v56 = vld [vmem:[#allocation3 + $0xe0] sm:$0xff] }
 0x229   : > { %v2189_v61 = vpack.c.bf16 %v1475_v58, %v1474_v56 }
 0x22b   : > { %2190 = vmatprep.subr.bf16.mxu0 %v2189_v61 }
 0x22c   : > { %2192 = vmatpush3.bf16.msra.mxu0 %v2191_v4 }
 0x22d   : > { %2194 = vmatprep.subr.bf16.mxu0 %v2193_v9 }
 0x230   : > { %2196 = vmatpush3.bf16.msra.mxu0 %v2195_v13 }
 0x2df   : > { %v2686_v22 = vpop.f32.mrb[0].mxu1 }
 0x2e0   : > { %v2688_v23 = vpop.f32.mrb[1].mxu1 }
 0x2e1   : > { %v1350_v24 = vmax.f32 %v2686_v22, %v2688_v23 }
 0x2e3   : > { %1351 = vmax.xlane.f32.xlu0 %v1350_v24  ;;  %v2692_v25 = vpop.f32.mrb[2].mxu1 }
 0x2e4   : > { %v2694_v26 = vpop.f32.mrb[3].mxu1 }
 0x2e5   : > { %v1353_v27 = vmax.f32 %v2692_v25, %v2694_v26 }
 0x2e7   : > { %1354 = vmax.xlane.f32.xlu0 %v1353_v27  ;;  %v2698_v28 = vpop.f32.mrb[4].mxu1 }
 0x2e8   : > { %v2700_v29 = vpop.f32.mrb[5].mxu1 }
 0x2e9   : > { %v1356_v30 = vmax.f32 %v2698_v28, %v2700_v29 }
 0x2eb   : > { %1357 = vmax.xlane.f32.xlu1 %v1356_v30  ;;  %v2704_v31 = vpop.f32.mrb[6].mxu1 }
 0x2ec   : > { %v2706_v32 = vpop.f32.mrb[7].mxu1 }
 0x2ed   : > { %v1359_v33 = vmax.f32 %v2704_v31, %v2706_v32 }
 0x2ef   : > { %1360 = vmax.xlane.f32.xlu1 %v1359_v33  ;;  %v2710_v34 = vpop.f32.mrb[8].mxu1 }
 0x2f0   : > { %v2712_v37 = vpop.f32.mrb[9].mxu1 }
 0x2f1   : > { %v1362_v43 = vmax.f32 %v2710_v34, %v2712_v37 }
 0x2f3   : > { %1363 = vmax.xlane.f32.xlu0 %v1362_v43  ;;  %v2716_v38 = vpop.f32.mrb[10].mxu1 }
 0x2f4   : > { %v2718_v48 = vpop.f32.mrb[11].mxu1 }
 0x2f5   : > { %v1365_v52 = vmax.f32 %v2716_v38, %v2718_v48 }
 0x2f7   : > { %1366 = vmax.xlane.f32.xlu1 %v1365_v52  ;;  %v2722_v55 = vpop.f32.mrb[12].mxu1 }
 0x2f8   : > { %v2724_v59 = vpop.f32.mrb[13].mxu1 }
 0x2f9   : > { %v1368_v1 = vmax.f32 %v2722_v55, %v2724_v59 }
 0x2fb   : > { %1369 = vmax.xlane.f32.xlu0 %v1368_v1  ;;  %v2728_v5 = vpop.f32.mrb[14].mxu1 }
 0x2fc   : > { %v2730_v8 = vpop.f32.mrb[15].mxu1 }
 0x2fd   : > { %v1371_v12 = vmax.f32 %v2728_v5, %v2730_v8 }
 0x2ff   : > { %1372 = vmax.xlane.f32.xlu1 %v1371_v12 }
 0x370   : > { %v1352_v14 = vpop.xlane.xlu0 %1351 }
 0x371   : > { %v1374_v15 = vsub.f32 %v2686_v22, %v1352_v14  ;;  %v1375_v16 = vsub.f32 %v2688_v23, %v1352_v14 }
 0x373   : > { %v1390_v17 = vmul.f32 1.442695, %v1374_v15  ;;  %v1392_v18 = vmul.f32 1.442695, %v1375_v16 }
 0x374   : > { %v1355_v19 = vpop.xlane.xlu0 %1354 }
 0x375   : > { %2237 = vpow2.f32 %v1390_v17  ;;  %v1376_v20 = vsub.f32 %v2692_v25, %v1355_v19  ;;  %v1377_v21 = vsub.f32 %v2694_v26, %v1355_v19 }
 0x376   : > { %2239 = vpow2.f32 %v1392_v18 }
 0x377   : > { %v1394_v24 = vmul.f32 1.442695, %v1376_v20  ;;  %v1396_v27 = vmul.f32 1.442695, %v1377_v21 }
 0x378   : > { %v1358_v30 = vpop.xlane.xlu1 %1357 }
 0x379   : > { %2241 = vpow2.f32 %v1394_v24  ;;  %v1378_v33 = vsub.f32 %v2698_v28, %v1358_v30  ;;  %v1379_v35 = vsub.f32 %v2700_v29, %v1358_v30 }
 0x37a   : > { %2243 = vpow2.f32 %v1396_v27 }
 0x37b   : > { %v1398_v22 = vmul.f32 1.442695, %v1378_v33  ;;  %v1400_v23 = vmul.f32 1.442695, %v1379_v35 }
 0x37c   : > { %v1361_v36 = vpop.xlane.xlu1 %1360 }
 0x37d   : > { %2245 = vpow2.f32 %v1398_v22  ;;  %v1380_v40 = vsub.f32 %v2704_v31, %v1361_v36  ;;  %v1381_v25 = vsub.f32 %v2706_v32, %v1361_v36 }
 0x37e   : > { %2247 = vpow2.f32 %v1400_v23 }
 0x37f   : > { %v2238_v26 = vpop.eup %2237  ;;  %v1402_v41 = vmul.f32 1.442695, %v1380_v40  ;;  %v1404_v42 = vmul.f32 1.442695, %v1381_v25  ;;  %v2750_v40 = vstv %s1599_s17 }
 0x380   : > { %v2240_v43 = vpop.eup %2239  ;;  %v1364_v44 = vpop.xlane.xlu0 %1363 }
 0x381   : > { %2249 = vpow2.f32 %v1402_v41  ;;  %1542 = vmatprep.mubr.f32.mxu0 %v2240_v43  ;;  %v1382_v28 = vsub.f32 %v2710_v34, %v1364_v44  ;;  %v1383_v29 = vsub.f32 %v2712_v37, %v1364_v44  ;;  %v1422_v39 = vadd.f32 %v2240_v43, %v2238_v26 }
 0x382   : > { %2251 = vpow2.f32 %v1404_v42  ;;  %1543 = vmatmul.mubr.f32.vlgmr.msra.gmra.mrb[8].mxu0 %v2238_v26 }
 0x383   : > { %v2242_v47 = vpop.eup %2241  ;;  %v1406_v49 = vmul.f32 1.442695, %v1382_v28  ;;  %v1408_v31 = vmul.f32 1.442695, %v1383_v29  ;;  %1423 = vadd.xlane.f32.xlu0 %v1422_v39 }
 0x384   : > { %v2244_v32 = vpop.eup %2243  ;;  %v1367_v50 = vpop.xlane.xlu1 %1366 }
 0x385   : > { %2253 = vpow2.f32 %v1406_v49  ;;  %1547 = vmatprep.mubr.f32.mxu0 %v2244_v32  ;;  %v1384_v51 = vsub.f32 %v2716_v38, %v1367_v50  ;;  %v1385_v52 = vsub.f32 %v2718_v48, %v1367_v50  ;;  %v1425_v54 = vadd.f32 %v2244_v32, %v2242_v47 }
 0x386   : > { %2255 = vpow2.f32 %v1408_v31  ;;  %1548 = vmatmul.mubr.f32.gmra.mrb[10].mxu0 %v2242_v47 }
 0x387   : > { %v2246_v34 = vpop.eup %2245  ;;  %v1410_v37 = vmul.f32 1.442695, %v1384_v51  ;;  %v1412_v56 = vmul.f32 1.442695, %v1385_v52  ;;  %1426 = vadd.xlane.f32.xlu1 %v1425_v54 }
 0x388   : > { %v2248_v58 = vpop.eup %2247  ;;  %v1370_v61 = vpop.xlane.xlu0 %1369 }
 0x389   : > { %2257 = vpow2.f32 %v1410_v37  ;;  %1552 = vmatprep.mubr.f32.mxu0 %v2248_v58  ;;  %v1386_v62 = vsub.f32 %v2722_v55, %v1370_v61  ;;  %v1387_v63 = vsub.f32 %v2724_v59, %v1370_v61  ;;  %v1428_v1 = vadd.f32 %v2248_v58, %v2246_v34 }
 0x38a   : > { %2259 = vpow2.f32 %v1412_v56  ;;  %1553 = vmatmul.mubr.f32.gmra.mrb[12].mxu0 %v2246_v34 }
 0x38b   : > { %v2250_v38 = vpop.eup %2249  ;;  %v1414_v48 = vmul.f32 1.442695, %v1386_v62  ;;  %v1416_v4 = vmul.f32 1.442695, %v1387_v63  ;;  %1429 = vadd.xlane.f32.xlu0 %v1428_v1 }
 0x38c   : > { %v2252_v6 = vpop.eup %2251  ;;  %v1373_v7 = vpop.xlane.xlu1 %1372 }
 0x38d   : > { %2261 = vpow2.f32 %v1414_v48  ;;  %1557 = vmatprep.mubr.f32.mxu0 %v2252_v6  ;;  %v1388_v9 = vsub.f32 %v2728_v5, %v1373_v7  ;;  %v1389_v10 = vsub.f32 %v2730_v8, %v1373_v7  ;;  %v1431_v11 = vadd.f32 %v2252_v6, %v2250_v38 }
 0x38e   : > { %2263 = vpow2.f32 %v1416_v4  ;;  %1558 = vmatmul.mubr.f32.gmra.mrb[14].mxu0 %v2250_v38 }
 0x38f   : > { %v2254_v55 = vpop.eup %2253  ;;  %v1418_v59 = vmul.f32 1.442695, %v1388_v9  ;;  %v1420_v12 = vmul.f32 1.442695, %v1389_v10  ;;  %1432 = vadd.xlane.f32.xlu1 %v1431_v11 }
 0x390   : > { %v2256_v13 = vpop.eup %2255 }
 0x391   : > { %2265 = vpow2.f32 %v1418_v59  ;;  %1562 = vmatprep.mubr.f32.mxu0 %v2256_v13  ;;  %v1434_v14 = vadd.f32 %v2256_v13, %v2254_v55 }
 0x392   : > { %2267 = vpow2.f32 %v1420_v12  ;;  %1563 = vmatmul.mubr.f32.gmra.mrb[16].mxu0 %v2254_v55 }
 0x393   : > { %v2258_v15 = vpop.eup %2257  ;;  %1435 = vadd.xlane.f32.xlu0 %v1434_v14 }
 0x394   : > { %v2260_v16 = vpop.eup %2259 }
 0x395   : > { %1567 = vmatprep.mubr.f32.mxu0 %v2260_v16  ;;  %v1437_v5 = vadd.f32 %v2260_v16, %v2258_v15 }
 0x396   : > { %1568 = vmatmul.mubr.f32.gmra.mrb[18].mxu0 %v2258_v15 }
 0x397   : > { %v2262_v8 = vpop.eup %2261  ;;  %1438 = vadd.xlane.f32.xlu1 %v1437_v5 }
 0x398   : > { %v2264_v17 = vpop.eup %2263 }
 0x399   : > { %1572 = vmatprep.mubr.f32.mxu0 %v2264_v17  ;;  %v1440_v18 = vadd.f32 %v2264_v17, %v2262_v8 }
 0x39a   : > { %1573 = vmatmul.mubr.f32.gmra.mrb[20].mxu0 %v2262_v8 }
 0x39b   : > { %v2266_v19 = vpop.eup %2265  ;;  %1441 = vadd.xlane.f32.xlu0 %v1440_v18 }
 0x39c   : > { %v2268_v20 = vpop.eup %2267 }
 0x39d   : > { %1577 = vmatprep.mubr.f32.mxu0 %v2268_v20  ;;  %v1443_v21 = vadd.f32 %v2268_v20, %v2266_v19 }
 0x39e   : > { %1578 = vmatmul.mubr.f32.gmra.mrb[22].mxu0 %v2266_v19 }
 0x39f   : > { %1444 = vadd.xlane.f32.xlu1 %v1443_v21 }
 0x410   : > { %v1424_v24 = vpop.xlane.xlu0 %1423 }
 0x411   : > { %2269 = vrcp.f32 %v1424_v24 }
 0x414   : > { %v1427_v27 = vpop.xlane.xlu1 %1426 }
 0x415   : > { %2271 = vrcp.f32 %v1427_v27 }
 0x418   : > { %v1430_v30 = vpop.xlane.xlu0 %1429 }
 0x419   : > { %2273 = vrcp.f32 %v1430_v30 }
 0x41b   : > { %v2270_v36 = vpop.eup %2269 }
 0x41c   : > { %v1433_v22 = vpop.xlane.xlu1 %1432 }
 0x41d   : > { %2275 = vrcp.f32 %v1433_v22 }
 0x41f   : > { %v2272_v28 = vpop.eup %2271 }
 0x420   : > { %v1436_v42 = vpop.xlane.xlu0 %1435 }
 0x421   : > { %2277 = vrcp.f32 %v1436_v42 }
 0x423   : > { %v2274_v51 = vpop.eup %2273 }
 0x424   : > { %v1439_v31 = vpop.xlane.xlu1 %1438 }
 0x425   : > { %2279 = vrcp.f32 %v1439_v31 }
 0x427   : > { %v2276_v61 = vpop.eup %2275 }
 0x42b   : > { %v2278_v6 = vpop.eup %2277 }
 0x42f   : > { %v2280_v59 = vpop.eup %2279 }
 0x455   : > { %v1977_v33 = vpop.f32.mrb[8].mxu0 }
 0x456   : > { %v1978_v35 = vpop.f32.mrb[9].mxu0 }
 0x457   : > { %v1979_v23 = vadd.f32 %v1978_v35, %v1977_v33 }
 0x459   : > { %v1591_v25 = vmul.f32 %v2270_v36, %v1979_v23  ;;  %v1980_v26 = vpop.f32.mrb[10].mxu0 }
 0x45a   : > { %v1981_v41 = vpop.f32.mrb[11].mxu0 }
 0x45b   : > { %v1601_v43 = vmul.f32 %v2750_v40, %v1591_v25  ;;  %v1982_v44 = vadd.f32 %v1981_v41, %v1980_v26 }
 0x45d   : > { %v1609_v29 = vadd.f32 %v1601_v43, %v2644_v45  ;;  %v1592_v39 = vmul.f32 %v2272_v28, %v1982_v44  ;;  %v1983_v47 = vpop.f32.mrb[12].mxu0  ;;  %v1442_v45 = vpop.xlane.xlu0 %1441 }
 0x45e   : > { %v1984_v49 = vpop.f32.mrb[13].mxu0  ;;  %2281 = vrcp.f32 %v1442_v45 }
 0x45f   : > { %1617 = vst.msk [vmem:[%s2421_s30] sm:$0xff] %vm1075_vm1, %v1609_v29  ;;  %v1602_v32 = vmul.f32 %v2750_v40, %v1592_v39  ;;  %v1985_v50 = vadd.f32 %v1984_v49, %v1983_v47 }
 0x461   : > { %v1610_v52 = vadd.f32 %v1602_v32, %v2649_v46  ;;  %v1593_v54 = vmul.f32 %v2274_v51, %v1985_v50  ;;  %v1986_v34 = vpop.f32.mrb[14].mxu0  ;;  %v1445_v46 = vpop.xlane.xlu1 %1444 }
 0x462   : > { %v1987_v37 = vpop.f32.mrb[15].mxu0  ;;  %2283 = vrcp.f32 %v1445_v46 }
 0x463   : > { %1618 = vst.msk [vmem:[%s2421_s30 + $0x8] sm:$0xff] %vm1075_vm1, %v1610_v52  ;;  %v1603_v56 = vmul.f32 %v2750_v40, %v1593_v54  ;;  %v1988_v58 = vadd.f32 %v1987_v37, %v1986_v34 }
 0x465   : > { %v1611_v62 = vadd.f32 %v1603_v56, %v2652_v53  ;;  %v1594_v63 = vmul.f32 %v2276_v61, %v1988_v58  ;;  %v1989_v1 = vpop.f32.mrb[16].mxu0 }
 0x466   : > { %v1990_v38 = vpop.f32.mrb[17].mxu0 }
 0x467   : > { %1619 = vst.msk [vmem:[%s2421_s30 + $0x10] sm:$0xff] %vm1075_vm1, %v1611_v62  ;;  %v1604_v48 = vmul.f32 %v2750_v40, %v1594_v63  ;;  %v1991_v4 = vadd.f32 %v1990_v38, %v1989_v1 }
 0x468   : > { %v2282_v5 = vpop.eup %2281 }
 0x469   : > { %v1612_v7 = vadd.f32 %v1604_v48, %v2659_v57  ;;  %v1595_v9 = vmul.f32 %v2278_v6, %v1991_v4  ;;  %v1992_v10 = vpop.f32.mrb[18].mxu0 }
 0x46a   : > { %v1993_v11 = vpop.f32.mrb[19].mxu0 }
 0x46b   : > { %1620 = vst.msk [vmem:[%s2421_s30 + $0x18] sm:$0xff] %vm1075_vm1, %v1612_v7  ;;  %v1605_v53 = vmul.f32 %v2750_v40, %v1595_v9  ;;  %v1994_v55 = vadd.f32 %v1993_v11, %v1992_v10 }
 0x46c   : > { %v2284_v21 = vpop.eup %2283 }
 0x46d   : > { %v1613_v12 = vadd.f32 %v1605_v53, %v2662_v60  ;;  %v1596_v13 = vmul.f32 %v2280_v59, %v1994_v55  ;;  %v1995_v14 = vpop.f32.mrb[20].mxu0 }
 0x46e   : > { %v1996_v15 = vpop.f32.mrb[21].mxu0 }
 0x46f   : > { %1621 = vst.msk [vmem:[%s2421_s30 + $0x20] sm:$0xff] %vm1075_vm1, %v1613_v12  ;;  %v1606_v57 = vmul.f32 %v2750_v40, %v1596_v13  ;;  %v1997_v16 = vadd.f32 %v1996_v15, %v1995_v14 }
 0x471   : > { %v1614_v8 = vadd.f32 %v1606_v57, %v2669_v0  ;;  %v1597_v17 = vmul.f32 %v2282_v5, %v1997_v16  ;;  %v1998_v18 = vpop.f32.mrb[22].mxu0 }
 0x472   : > { %v1999_v19 = vpop.f32.mrb[23].mxu0 }
 0x473   : > { %1622 = vst.msk [vmem:[%s2421_s30 + $0x28] sm:$0xff] %vm1075_vm1, %v1614_v8  ;;  %v1607_v60 = vmul.f32 %v2750_v40, %v1597_v17  ;;  %v2000_v20 = vadd.f32 %v1999_v19, %v1998_v18 }
 0x475   : > { %v1615_v24 = vadd.f32 %v1607_v60, %v2672_v2  ;;  %v1598_v27 = vmul.f32 %v2284_v21, %v2000_v20 }
 0x477   : > { %1623 = vst.msk [vmem:[%s2421_s30 + $0x30] sm:$0xff] %vm1075_vm1, %v1615_v24  ;;  %v1608_v30 = vmul.f32 %v2750_v40, %v1598_v27 }
 0x479   : > { %v1616_v33 = vadd.f32 %v1608_v30, %v2679_v3 }
 0x47b   : > { %1624 = vst.msk [vmem:[%s2421_s30 + $0x38] sm:$0xff] %vm1075_vm1, %v1616_v33 }
 0x47c PF: > { %s20_s15 = sadd.s32 1, %s2323_s15   ;;  %s2809_s11 = smov %s2315_s13 }
 0x47d   : > { %p17_p8 = scmp.ge.s32.totalorder %s20_s15, 10   ;;  %s2810_s12 = smov %s2319_s14 }
 0x47e   : > { %s2811_s13 = smov %s2814_s0  ;;  %s2812_s14 = smov %s2818_s16 }
 0x47f   :  { %19 = sbr.rel (!%p17_p8) target bundleno = 3 (0x3), region = 93 }

</bundles_post_ra>
